<compile_context>
chip_gen: v5e
topology: v5e:2x2
jax: 0.10.0
libtpu: 0.0.40
codegen_flags: <defaults>
</compile_context>

<pallas_src>
import jax
import jax.numpy as jnp
from jax.experimental import pallas as pl
from jax.experimental.pallas import tpu as pltpu


def _round_up(n, m):
    return ((n + m - 1) // m) * m


def _resblock_kernel(x_ref, bn1_scale_ref, bn1_shift_ref,
                     wc_ref, c1_ref, w2_ref, bias_ref, o_ref):
    # start_norm: folded BatchNorm1d(in) + ReLU, f32 on the VPU.
    h = jnp.maximum(x_ref[...] * bn1_scale_ref[...] + bn1_shift_ref[...], 0.0)
    h_mx = h.astype(wc_ref.dtype)  # bf16 (or f32) MXU operand

    # Fused first matmul: Wc = [W1*bn2_scale || Ws]. One lane-dense MXU pass that
    # produces both the main-branch pre-activation and the shortcut projection.
    z = jnp.dot(h_mx, wc_ref[...], preferred_element_type=jnp.float32)

    n_out = o_ref.shape[-1]            # padded out_features (multiple of 128)
    y_pre = z[:, :n_out] + c1_ref[...]  # Linear1 + BN2 (scale folded into Wc, b1 into c1)
    residual = z[:, n_out:]             # shortcut Linear (its bias lives in `bias_ref`)

    # ReLU, then second Linear; single fused epilogue bias (bs + b2).
    y = jnp.maximum(y_pre, 0.0).astype(w2_ref.dtype)
    out = jnp.dot(y, w2_ref[...], preferred_element_type=jnp.float32)
    o_ref[...] = (out + residual + bias_ref[...]).astype(o_ref.dtype)


def resblock_forward(x, folded, *, tile_b=256):
    """x: [B, F_in] float32. folded: dict from fold_params (padded/fused weights)."""
    B, F_in = x.shape
    assert folded["in_features"] == F_in
    F_out = folded["out_features"]
    F_in_pad = folded["wc"].shape[0]
    F_out_pad = folded["w2"].shape[1]

    # Batch tile: as large as requested, clamped to the (8-aligned) padded batch.
    tile_b = _round_up(max(8, min(tile_b, _round_up(B, 8))), 8)
    B_pad = _round_up(B, tile_b)

    x_pad = x
    if (B_pad, F_in_pad) != (B, F_in):
        x_pad = jnp.zeros((B_pad, F_in_pad), x.dtype).at[:B, :F_in].set(x)

    grid = (pl.cdiv(B_pad, tile_b),)

    def row_map(i):
        return (i, 0)

    def const_map(i):
        return (0, 0)

    in_specs = [
        pl.BlockSpec((tile_b, F_in_pad), row_map),          # x
        pl.BlockSpec((1, F_in_pad), const_map),             # bn1_scale
        pl.BlockSpec((1, F_in_pad), const_map),             # bn1_shift
        pl.BlockSpec((F_in_pad, 2 * F_out_pad), const_map),  # Wc = [W1*bn2_scale || Ws]
        pl.BlockSpec((1, F_out_pad), const_map),             # c1 = b1*bn2_scale + bn2_shift
        pl.BlockSpec((F_out_pad, F_out_pad), const_map),     # W2
        pl.BlockSpec((1, F_out_pad), const_map),             # bias = bs + b2
    ]
    out_spec = pl.BlockSpec((tile_b, F_out_pad), row_map)

    fn = pl.pallas_call(
        _resblock_kernel,
        out_shape=jax.ShapeDtypeStruct((B_pad, F_out_pad), x.dtype),
        grid_spec=pltpu.PrefetchScalarGridSpec(
            num_scalar_prefetch=0,
            grid=grid,
            in_specs=in_specs,
            out_specs=out_spec,
        ),
        compiler_params=pltpu.CompilerParams(
            dimension_semantics=("parallel",),
        ),
    )
    out = fn(x_pad, folded["bn1_scale"], folded["bn1_shift"],
             folded["wc"], folded["c1"], folded["w2"], folded["bias"])
    return out[:B, :F_out]


def make_params(key, in_features, out_features, eps=1e-5):
    """Deterministic synthetic parameters (shapes match the nn.Module __init__)."""
    ks = jax.random.split(key, 14)

    def linear(kw, kb, fin, fout):
        # PyTorch Linear weight is [fout, fin]; store transposed [fin, fout].
        bound = 1.0 / jnp.sqrt(jnp.float32(fin))
        w = jax.random.uniform(kw, (fin, fout), jnp.float32, -bound, bound)
        b = jax.random.uniform(kb, (fout,), jnp.float32, -bound, bound)
        return w, b

    def bn(kg, kb, km, kv, feats):
        gamma = 1.0 + 0.1 * jax.random.normal(kg, (feats,), jnp.float32)
        beta = 0.1 * jax.random.normal(kb, (feats,), jnp.float32)
        rmean = 0.1 * jax.random.normal(km, (feats,), jnp.float32)
        rvar = jnp.abs(jax.random.normal(kv, (feats,), jnp.float32)) + 0.5
        scale = gamma / jnp.sqrt(rvar + eps)
        shift = beta - rmean * scale
        return scale, shift

    bn1_scale, bn1_shift = bn(ks[0], ks[1], ks[2], ks[3], in_features)
    ws, bs = linear(ks[4], ks[5], in_features, out_features)
    w1, b1 = linear(ks[6], ks[7], in_features, out_features)
    bn2_scale, bn2_shift = bn(ks[8], ks[9], ks[10], ks[11], out_features)
    w2, b2 = linear(ks[12], ks[13], out_features, out_features)

    return dict(bn1_scale=bn1_scale, bn1_shift=bn1_shift, ws=ws, bs=bs,
                w1=w1, b1=b1, bn2_scale=bn2_scale, bn2_shift=bn2_shift,
                w2=w2, b2=b2)


def fold_params(p, *, matmul_dtype=jnp.bfloat16):
    """Fold BN2/biases into the weights, pad features to multiples of 128, and
    concatenate the shortcut weight with the (scaled) first-layer weight."""
    F_in, F_out = p["w1"].shape
    F_in_pad = _round_up(F_in, 128)
    F_out_pad = _round_up(F_out, 128)

    w1_folded = p["w1"] * p["bn2_scale"][None, :]          # BN2 scale -> W1 columns
    c1 = p["b1"] * p["bn2_scale"] + p["bn2_shift"]          # b1 folded into BN2 shift
    bias = p["bs"] + p["b2"]                                # single epilogue bias

    wc = jnp.zeros((F_in_pad, 2 * F_out_pad), jnp.float32)
    wc = wc.at[:F_in, :F_out].set(w1_folded)
    wc = wc.at[:F_in, F_out_pad:F_out_pad + F_out].set(p["ws"])

    w2 = jnp.zeros((F_out_pad, F_out_pad), jnp.float32)
    w2 = w2.at[:F_out, :F_out].set(p["w2"])

    def pad_row(v, n_pad):
        return jnp.zeros((1, n_pad), jnp.float32).at[0, :v.shape[0]].set(v)

    return dict(
        in_features=F_in, out_features=F_out,
        bn1_scale=pad_row(p["bn1_scale"], F_in_pad),
        bn1_shift=pad_row(p["bn1_shift"], F_in_pad),
        wc=wc.astype(matmul_dtype),
        c1=pad_row(c1, F_out_pad),
        w2=w2.astype(matmul_dtype),
        bias=pad_row(bias, F_out_pad),
    )


def resblock_ref(x, p):
    """Pure-JAX f32 reference with the original (unfolded) module semantics."""
    h = jnp.maximum(x * p["bn1_scale"][None, :] + p["bn1_shift"][None, :], 0.0)
    residual = h @ p["ws"] + p["bs"][None, :]
    y = h @ p["w1"] + p["b1"][None, :]
    y = jnp.maximum(y * p["bn2_scale"][None, :] + p["bn2_shift"][None, :], 0.0)
    y = y @ p["w2"] + p["b2"][None, :]
    return y + residual


if __name__ == "__main__":
    # TODO(synk): shake-shake / shake-drop / dropout branches are disabled by config
    # (training-time stochastic regularizers); BN uses inference-mode running stats.

    # Case 1: small demo shapes, exact-math (f32 matmul) path -> tight tolerance.
    B, F_IN, F_OUT = 8, 32, 64
    key = jax.random.PRNGKey(0)
    kx, kp = jax.random.split(key)
    x = jax.random.normal(kx, (B, F_IN), jnp.float32)
    params = make_params(kp, F_IN, F_OUT)
    ref = resblock_ref(x, params)

    folded_f32 = fold_params(params, matmul_dtype=jnp.float32)
    out_f32 = jax.block_until_ready(resblock_forward(x, folded_f32))
    assert out_f32.shape == (B, F_OUT)
    assert jnp.allclose(out_f32, ref, atol=1e-4, rtol=1e-4), "f32 path mismatch"

    # Case 2: same shapes, bf16-MXU fast path (f32 accumulation) -> loose tolerance.
    folded_bf16 = fold_params(params, matmul_dtype=jnp.bfloat16)
    out_bf16 = jax.block_until_ready(resblock_forward(x, folded_bf16))
    assert jnp.allclose(out_bf16, ref, atol=5e-2, rtol=5e-2), "bf16 path mismatch"

    # Case 3: ragged shapes + multi-step grid (exercises batch/feature padding).
    B2, F_IN2, F_OUT2 = 20, 48, 80
    kx2, kp2 = jax.random.split(jax.random.PRNGKey(1))
    x2 = jax.random.normal(kx2, (B2, F_IN2), jnp.float32)
    params2 = make_params(kp2, F_IN2, F_OUT2)
    ref2 = resblock_ref(x2, params2)
    out2 = jax.block_until_ready(
        resblock_forward(x2, fold_params(params2), tile_b=8))
    assert out2.shape == (B2, F_OUT2)
    assert jnp.allclose(out2, ref2, atol=5e-2, rtol=5e-2), "ragged-shape mismatch"

    print("KERNEL_OK")
</pallas_src>

<mosaic_0001>
module attributes {stable_mosaic.version = 11 : i64} {
  func.func @_resblock_kernel(%arg0: i32, %arg1: memref<8x128xf32, #tpu.memory_space<vmem>>, %arg2: memref<1x128xf32, #tpu.memory_space<vmem>>, %arg3: memref<1x128xf32, #tpu.memory_space<vmem>>, %arg4: memref<128x256xf32, #tpu.memory_space<vmem>>, %arg5: memref<1x128xf32, #tpu.memory_space<vmem>>, %arg6: memref<128x128xf32, #tpu.memory_space<vmem>>, %arg7: memref<1x128xf32, #tpu.memory_space<vmem>>, %arg8: memref<8x128xf32, #tpu.memory_space<vmem>>) attributes {dimension_semantics = [#tpu.dimension_semantics<parallel>], iteration_bounds = array<i64: 1>, scalar_prefetch = 0 : i64, scratch_operands = 0 : i64, tpu.core_type = #tpu.core_type<tc>, window_params = [{transform_indices = @transform_0, window_bounds = array<i64: 8, 128>}, {pipeline_mode = #tpu.pipeline_mode<synchronous>, transform_indices = @transform_1, window_bounds = array<i64: 1, 128>}, {pipeline_mode = #tpu.pipeline_mode<synchronous>, transform_indices = @transform_2, window_bounds = array<i64: 1, 128>}, {pipeline_mode = #tpu.pipeline_mode<synchronous>, transform_indices = @transform_3, window_bounds = array<i64: 128, 256>}, {pipeline_mode = #tpu.pipeline_mode<synchronous>, transform_indices = @transform_4, window_bounds = array<i64: 1, 128>}, {pipeline_mode = #tpu.pipeline_mode<synchronous>, transform_indices = @transform_5, window_bounds = array<i64: 128, 128>}, {pipeline_mode = #tpu.pipeline_mode<synchronous>, transform_indices = @transform_6, window_bounds = array<i64: 1, 128>}, {transform_indices = @transform_7, window_bounds = array<i64: 8, 128>}]} {
    %c0 = arith.constant 0 : index
    %c0_0 = arith.constant 0 : index
    %0 = vector.load %arg1[%c0, %c0_0] : memref<8x128xf32, #tpu.memory_space<vmem>>, vector<8x128xf32>
    %c0_1 = arith.constant 0 : index
    %c0_2 = arith.constant 0 : index
    %1 = vector.load %arg2[%c0_1, %c0_2] : memref<1x128xf32, #tpu.memory_space<vmem>>, vector<1x128xf32>
    %2 = vector.broadcast %1 : vector<1x128xf32> to vector<8x128xf32>
    %3 = arith.mulf %0, %2 : vector<8x128xf32>
    %c0_3 = arith.constant 0 : index
    %c0_4 = arith.constant 0 : index
    %4 = vector.load %arg3[%c0_3, %c0_4] : memref<1x128xf32, #tpu.memory_space<vmem>>, vector<1x128xf32>
    %5 = vector.broadcast %4 : vector<1x128xf32> to vector<8x128xf32>
    %6 = arith.addf %3, %5 : vector<8x128xf32>
    %cst = arith.constant 0.000000e+00 : f32
    %7 = vector.broadcast %cst : f32 to vector<8x128xf32>
    %8 = arith.maximumf %6, %7 : vector<8x128xf32>
    %c0_5 = arith.constant 0 : index
    %c0_6 = arith.constant 0 : index
    %9 = vector.load %arg4[%c0_5, %c0_6] : memref<128x256xf32, #tpu.memory_space<vmem>>, vector<128x256xf32>
    %cst_7 = arith.constant dense<0.000000e+00> : vector<8x256xf32>
    %10 = tpu.matmul %8, %9, %cst_7 {dimension_numbers = #tpu.dot_dimension_numbers<[1], [0], [0], [1], [0, 0, 1, 1], [], []>} : vector<8x128xf32>, vector<128x256xf32>, vector<8x256xf32> -> vector<8x256xf32>
    %11 = vector.extract_strided_slice %10 {offsets = [0, 0], sizes = [8, 128], strides = [1, 1]} : vector<8x256xf32> to vector<8x128xf32>
    %c0_8 = arith.constant 0 : index
    %c0_9 = arith.constant 0 : index
    %12 = vector.load %arg5[%c0_8, %c0_9] : memref<1x128xf32, #tpu.memory_space<vmem>>, vector<1x128xf32>
    %13 = vector.broadcast %12 : vector<1x128xf32> to vector<8x128xf32>
    %14 = arith.addf %11, %13 : vector<8x128xf32>
    %15 = vector.extract_strided_slice %10 {offsets = [0, 128], sizes = [8, 128], strides = [1, 1]} : vector<8x256xf32> to vector<8x128xf32>
    %cst_10 = arith.constant 0.000000e+00 : f32
    %16 = vector.broadcast %cst_10 : f32 to vector<8x128xf32>
    %17 = arith.maximumf %14, %16 : vector<8x128xf32>
    %c0_11 = arith.constant 0 : index
    %c0_12 = arith.constant 0 : index
    %18 = vector.load %arg6[%c0_11, %c0_12] : memref<128x128xf32, #tpu.memory_space<vmem>>, vector<128x128xf32>
    %cst_13 = arith.constant dense<0.000000e+00> : vector<8x128xf32>
    %19 = tpu.matmul %17, %18, %cst_13 {dimension_numbers = #tpu.dot_dimension_numbers<[1], [0], [0], [1], [0, 0, 1, 1], [], []>} : vector<8x128xf32>, vector<128x128xf32>, vector<8x128xf32> -> vector<8x128xf32>
    %20 = arith.addf %19, %15 : vector<8x128xf32>
    %c0_14 = arith.constant 0 : index
    %c0_15 = arith.constant 0 : index
    %21 = vector.load %arg7[%c0_14, %c0_15] : memref<1x128xf32, #tpu.memory_space<vmem>>, vector<1x128xf32>
    %22 = vector.broadcast %21 : vector<1x128xf32> to vector<8x128xf32>
    %23 = arith.addf %20, %22 : vector<8x128xf32>
    %c0_16 = arith.constant 0 : index
    %c0_17 = arith.constant 0 : index
    %24 = vector.load %arg8[%c0_16, %c0_17] : memref<8x128xf32, #tpu.memory_space<vmem>>, vector<8x128xf32>
    tpu.vector_store %arg8[%c0_16, %c0_17], %23 {strides = array<i32>} : memref<8x128xf32, #tpu.memory_space<vmem>>, vector<8x128xf32>,
    return
  }
  func.func @transform_0(%arg0: i32) -> (i32, i32) {
    %c0_i32 = arith.constant 0 : i32
    %c0_i32_0 = arith.constant 0 : i32
    return %arg0, %c0_i32 : i32, i32
  }
  func.func @transform_1(%arg0: i32) -> (i32, i32) {
    %c0_i32 = arith.constant 0 : i32
    %c0_i32_0 = arith.constant 0 : i32
    %c0_i32_1 = arith.constant 0 : i32
    return %c0_i32, %c0_i32_0 : i32, i32
  }
  func.func @transform_2(%arg0: i32) -> (i32, i32) {
    %c0_i32 = arith.constant 0 : i32
    %c0_i32_0 = arith.constant 0 : i32
    %c0_i32_1 = arith.constant 0 : i32
    return %c0_i32, %c0_i32_0 : i32, i32
  }
  func.func @transform_3(%arg0: i32) -> (i32, i32) {
    %c0_i32 = arith.constant 0 : i32
    %c0_i32_0 = arith.constant 0 : i32
    %c0_i32_1 = arith.constant 0 : i32
    return %c0_i32, %c0_i32_0 : i32, i32
  }
  func.func @transform_4(%arg0: i32) -> (i32, i32) {
    %c0_i32 = arith.constant 0 : i32
    %c0_i32_0 = arith.constant 0 : i32
    %c0_i32_1 = arith.constant 0 : i32
    return %c0_i32, %c0_i32_0 : i32, i32
  }
  func.func @transform_5(%arg0: i32) -> (i32, i32) {
    %c0_i32 = arith.constant 0 : i32
    %c0_i32_0 = arith.constant 0 : i32
    %c0_i32_1 = arith.constant 0 : i32
    return %c0_i32, %c0_i32_0 : i32, i32
  }
  func.func @transform_6(%arg0: i32) -> (i32, i32) {
    %c0_i32 = arith.constant 0 : i32
    %c0_i32_0 = arith.constant 0 : i32
    %c0_i32_1 = arith.constant 0 : i32
    return %c0_i32, %c0_i32_0 : i32, i32
  }
  func.func @transform_7(%arg0: i32) -> (i32, i32) {
    %c0_i32 = arith.constant 0 : i32
    %c0_i32_0 = arith.constant 0 : i32
    return %arg0, %c0_i32 : i32, i32
  }
}

</mosaic_0001>

<bundles_post_ra>
// kernel: tpu_custom_call.1
= control target key start
LH: loop header
LB: loop body
LE: loop exit
PB: predicated region body
PF: predicated region fallthrough
CT: control target
= control target key end

     0   :  { %12 = vsyncpa [#allocation3], 0  ;;  %s451_s0 = inlined_call_operand.hbm [shape: f32[8,128], index: 0, kind: input, shape index: {}]   ;;  %s452_s1 = inlined_call_operand.hbm [shape: f32[1,128], index: 1, kind: input, shape index: {}]   ;;  %s453_s2 = inlined_call_operand.vmem [shape: f32[1,128], index: 2, kind: input, shape index: {}]   ;;  %s454_s3 = inlined_call_operand.hbm [shape: f32[128,256], index: 3, kind: input, shape index: {}]   ;;  %s455_s4 = inlined_call_operand.vmem [shape: f32[1,128], index: 4, kind: input, shape index: {}]   ;;  %s456_s5 = inlined_call_operand.hbm [shape: f32[128,128], index: 5, kind: input, shape index: {}]   ;;  %s457_s6 = inlined_call_operand.vmem [shape: f32[1,128], index: 6, kind: input, shape index: {}]   ;;  %s458_s7 = inlined_call_operand.hbm [shape: f32[8,128], index: 7, kind: output, shape index: {}]  }
   0x1   :  { %13 = vsyncpa [#allocation6], 0 }
   0x2   :  { %14 = vsyncpa [#allocation9], 0  ;;  %s32_s26 = sshll.u32 %s452_s1, 4  ;;  %s33_s26 = int_to_ptr.hbm [resolvable:$true] %s32_s26 }
   0x3   :  { %15 = vsyncpa [#allocation4], 0  ;;  %s378_s27 = smov [#allocation5]   ;;  %s21_s8 = sshll.u32 %s451_s0, 4  ;;  %s22_s8 = int_to_ptr.hbm [resolvable:$true] %s21_s8 }
   0x4   :  { %s34_s28 = sshll.u32 %s378_s27, 4  ;;  %s379_s9 = smov [#allocation2]   ;;  %s35_s28 = int_to_ptr.vmem [resolvable:$true] %s34_s28 }
   0x5   :  { %37 = dma.hbm_to_vmem [thread:$0]  %s33_s26, 16, %s35_s28, [#allocation6]  }
   0x6   :  { %s23_s10 = sshll.u32 %s379_s9, 4  ;;  %s44_s13 = sshll.u32 %s454_s3, 4  ;;  %s24_s10 = int_to_ptr.vmem [resolvable:$true] %s23_s10  ;;  %s45_s13 = int_to_ptr.hbm [resolvable:$true] %s44_s13 }
   0x7   :  { %26 = dma.hbm_to_vmem [thread:$0]  %s22_s8, 128, %s24_s10, [#allocation3]  }
   0x8   :  { %s380_s1 = smov [#allocation7]   ;;  %s59_s17 = sshll.u32 %s456_s5, 4  ;;  %s60_s17 = int_to_ptr.hbm [resolvable:$true] %s59_s17 }
   0x9   :  { %s46_s14 = sshll.u32 %s380_s1, 4  ;;  %s381_s18 = smov 256   ;;  %s47_s14 = int_to_ptr.vmem [resolvable:$true] %s46_s14 }
   0xa   :  { %s382_s0 = smov 16   ;;  %s383_s19 = smov [#allocation8]  }
   0xb   :  { %52 = dma.hbm_to_vmem [thread:$0]  %s45_s13, 4096, %s47_s14, [#allocation6], %s381_s18, %s381_s18, %s382_s0  }
   0xc   :  { %s61_s20 = sshll.u32 %s383_s19, 4  ;;  %s384_s21 = smov 128   ;;  %s62_s20 = int_to_ptr.vmem [resolvable:$true] %s61_s20 }
   0xd   :  { %s385_s22 = smov 8  }
   0xe   :  { %67 = dma.hbm_to_vmem [thread:$0]  %s60_s17, 2048, %s62_s20, [#allocation9], %s384_s21, %s384_s21, %s385_s22  }
   0xf   :  { %370 = dma.done.wait [#allocation3], 128  }
  0x10   :  { %371 = vsyncadd [#allocation3], 4294967168 }
  0x11   :  { %372 = dma.done.wait [#allocation6], 4112  }
  0x12   :  { %373 = vsyncadd [#allocation6], 4294963184 }
  0x13   :  { %374 = dma.done.wait [#allocation9], 2048  }
  0x14   :  { %375 = vsyncadd [#allocation9], 4294965248  ;;  %v128_v0 = vld [vmem:[#allocation7 + $0xf0] sm:$0xff]  ;;  %v126_v1 = vld [vmem:[#allocation7 + $0xe0] sm:$0xff]  ;;  %s386_s26 = smov [#allocation10]   ;;  %s225_s30 = sshll.u32 %s458_s7, 4  ;;  %s226_s30 = int_to_ptr.hbm [resolvable:$true] %s225_s30 }
  0x15   :  { %130 = vmatpush.msra.mxu0 %v128_v0  ;;  %v124_v2 = vld [vmem:[#allocation7 + $0xd0] sm:$0xff]  ;;  %v122_v3 = vld [vmem:[#allocation7 + $0xc0] sm:$0xff]  ;;  %v191_v5 = vld [vmem:[#allocation8 + $0x78] sm:$0xff]  ;;  %s223_s27 = sshll.u32 %s386_s26, 4  ;;  %s224_s27 = int_to_ptr.vmem [resolvable:$true] %s223_s27 }
  0x16   :  { %v120_v4 = vld [vmem:[#allocation7 + $0xb0] sm:$0xff]  ;;  %v118_v7 = vld [vmem:[#allocation7 + $0xa0] sm:$0xff]  ;;  %192 = vmatpush.msra.mxu2 %v191_v5  ;;  %v129_v8 = vld [vmem:[#allocation7 + $0xf8] sm:$0xff] }
  0x17   :  { %131 = vmatpush.msra.mxu0 %v126_v1  ;;  %v190_v6 = vld [vmem:[#allocation8 + $0x70] sm:$0xff]  ;;  %v127_v9 = vld [vmem:[#allocation7 + $0xe8] sm:$0xff]  ;;  %150 = vmatpush.msra.mxu1 %v129_v8  ;;  %v125_v12 = vld [vmem:[#allocation7 + $0xd8] sm:$0xff] }
  0x18   :  { %v189_v10 = vld [vmem:[#allocation8 + $0x68] sm:$0xff]  ;;  %v116_v11 = vld [vmem:[#allocation7 + $0x90] sm:$0xff]  ;;  %193 = vmatpush.msra.mxu2 %v190_v6  ;;  %v188_v13 = vld [vmem:[#allocation8 + $0x60] sm:$0xff] }
  0x19   :  { %132 = vmatpush.msra.mxu0 %v124_v2  ;;  %151 = vmatpush.msra.mxu1 %v127_v9  ;;  %v114_v14 = vld [vmem:[#allocation7 + $0x80] sm:$0xff]  ;;  %v123_v15 = vld [vmem:[#allocation7 + $0xc8] sm:$0xff]  ;;  %v187_v16 = vld [vmem:[#allocation8 + $0x58] sm:$0xff] }
  0x1a   :  { %194 = vmatpush.msra.mxu2 %v189_v10  ;;  %v112_v17 = vld [vmem:[#allocation7 + $0x70] sm:$0xff]  ;;  %v121_v18 = vld [vmem:[#allocation7 + $0xb8] sm:$0xff]  ;;  %v110_v20 = vld [vmem:[#allocation7 + $0x60] sm:$0xff] }
  0x1b   :  { %133 = vmatpush.msra.mxu0 %v122_v3  ;;  %152 = vmatpush.msra.mxu1 %v125_v12  ;;  %v186_v19 = vld [vmem:[#allocation8 + $0x50] sm:$0xff]  ;;  %v246_v21 = vld [vmem:[#allocation5] ss:$0 sm:$0xff]  ;;  %v119_v22 = vld [vmem:[#allocation7 + $0xa8] sm:$0xff] }
  0x1c   :  { %195 = vmatpush.msra.mxu2 %v188_v13  ;;  %v86_v23 = vld [vmem:[#allocation2] sm:$0xff]  ;;  %v185_v24 = vld [vmem:[#allocation8 + $0x48] sm:$0xff]  ;;  %v184_v27 = vld [vmem:[#allocation8 + $0x40] sm:$0xff] }
  0x1d   :  { %134 = vmatpush.msra.mxu0 %v120_v4  ;;  %153 = vmatpush.msra.mxu1 %v123_v15  ;;  %v108_v25 = vld [vmem:[#allocation7 + $0x50] sm:$0xff]  ;;  %v117_v26 = vld [vmem:[#allocation7 + $0x98] sm:$0xff]  ;;  %v106_v28 = vld [vmem:[#allocation7 + $0x40] sm:$0xff]  ;;  %v91_v29 = vmul.f32 %v246_v21, %v86_v23 }
  0x1e   :  { %196 = vmatpush.msra.mxu2 %v187_v16  ;;  %v247_v30 = vld [vmem:[%s453_s2] ss:$0 sm:$0xff]  ;;  %v115_v31 = vld [vmem:[#allocation7 + $0x88] sm:$0xff]  ;;  %v183_v32 = vld [vmem:[#allocation8 + $0x38] sm:$0xff] }
  0x1f   :  { %135 = vmatpush.msra.mxu0 %v118_v7  ;;  %154 = vmatpush.msra.mxu1 %v121_v18  ;;  %v104_v33 = vld [vmem:[#allocation7 + $0x30] sm:$0xff]  ;;  %v113_v34 = vld [vmem:[#allocation7 + $0x78] sm:$0xff]  ;;  %v102_v36 = vld [vmem:[#allocation7 + $0x20] sm:$0xff]  ;;  %v96_v37 = vadd.f32 %v247_v30, %v91_v29 }
  0x20   :  { %197 = vmatpush.msra.mxu2 %v186_v19  ;;  %v182_v35 = vld [vmem:[#allocation8 + $0x30] sm:$0xff]  ;;  %v111_v38 = vld [vmem:[#allocation7 + $0x68] sm:$0xff]  ;;  %v180_v41 = vld [vmem:[#allocation8 + $0x20] sm:$0xff] }
  0x21   :  { %136 = vmatpush.msra.mxu0 %v116_v11  ;;  %155 = vmatpush.msra.mxu1 %v119_v22  ;;  %v181_v39 = vld [vmem:[#allocation8 + $0x28] sm:$0xff]  ;;  %v100_v40 = vld [vmem:[#allocation7 + $0x10] sm:$0xff]  ;;  %v98_v42 = vld [vmem:[#allocation7] sm:$0xff]  ;;  %v97_v43 = vmax.f32 %v96_v37, 0.0 }
  0x22   :  { %198 = vmatpush.msra.mxu2 %v185_v24  ;;  %v179_v44 = vld [vmem:[#allocation8 + $0x18] sm:$0xff]  ;;  %v178_v46 = vld [vmem:[#allocation8 + $0x10] sm:$0xff]  ;;  %v107_v47 = vld [vmem:[#allocation7 + $0x48] sm:$0xff] }
  0x23   :  { %137 = vmatpush.msra.mxu0 %v114_v14  ;;  %156 = vmatpush.msra.mxu1 %v117_v26  ;;  %v109_v45 = vld [vmem:[#allocation7 + $0x58] sm:$0xff]  ;;  %v177_v48 = vld [vmem:[#allocation8 + $0x8] sm:$0xff]  ;;  %v176_v50 = vld [vmem:[#allocation8] sm:$0xff] }
  0x24   :  { %199 = vmatpush.msra.mxu2 %v184_v27  ;;  %v105_v49 = vld [vmem:[#allocation7 + $0x38] sm:$0xff]  ;;  %v103_v51 = vld [vmem:[#allocation7 + $0x28] sm:$0xff]  ;;  %v248_v54 = vld [vmem:[%s455_s4] ss:$0 sm:$0xff] }
  0x25   :  { %138 = vmatpush.msra.mxu0 %v112_v17  ;;  %157 = vmatpush.msra.mxu1 %v115_v31  ;;  %v101_v52 = vld [vmem:[#allocation7 + $0x18] sm:$0xff]  ;;  %v99_v53 = vld [vmem:[#allocation7 + $0x8] sm:$0xff]  ;;  %v249_v59 = vld [vmem:[%s457_s6] ss:$0 sm:$0xff] }
  0x26   :  { %200 = vmatpush.msra.mxu2 %v183_v32 }
  0x27   :  { %139 = vmatpush.msra.mxu0 %v110_v20  ;;  %158 = vmatpush.msra.mxu1 %v113_v34 }
  0x28   :  { %201 = vmatpush.msra.mxu2 %v182_v35 }
  0x29   :  { %140 = vmatpush.msra.mxu0 %v108_v25  ;;  %159 = vmatpush.msra.mxu1 %v111_v38 }
  0x2a   :  { %202 = vmatpush.msra.mxu2 %v181_v39 }
  0x2b   :  { %141 = vmatpush.msra.mxu0 %v106_v28  ;;  %160 = vmatpush.msra.mxu1 %v109_v45 }
  0x2c   :  { %203 = vmatpush.msra.mxu2 %v180_v41 }
  0x2d   :  { %142 = vmatpush.msra.mxu0 %v104_v33  ;;  %161 = vmatpush.msra.mxu1 %v107_v47 }
  0x2e   :  { %204 = vmatpush.msra.mxu2 %v179_v44 }
  0x2f   :  { %143 = vmatpush.msra.mxu0 %v102_v36  ;;  %162 = vmatpush.msra.mxu1 %v105_v49 }
  0x30   :  { %205 = vmatpush.msra.mxu2 %v178_v46 }
  0x31   :  { %144 = vmatpush.msra.mxu0 %v100_v40  ;;  %163 = vmatpush.msra.mxu1 %v103_v51 }
  0x32   :  { %206 = vmatpush.msra.mxu2 %v177_v48 }
  0x33   :  { %145 = vmatpush.msra.mxu0 %v98_v42  ;;  %164 = vmatpush.msra.mxu1 %v101_v52 }
  0x34   :  { %146 = vmatmul.f32.vlgmr.msra.gmra.mxu0 %v97_v43  ;;  %207 = vmatpush.msra.mxu2 %v176_v50 }
  0x35   :  { %165 = vmatpush.msra.mxu1 %v99_v53 }
  0x36   :  { %166 = vmatmul.f32.vlgmr.msra.gmra.mxu1 %v97_v43 }
  0xb1   :  { %v147_v55 = vpop.f32.mrf.mxu0 }
  0xb2   :  { %v174_v56 = vadd.f32 %v248_v54, %v147_v55 }
  0xb3   :  { %v167_v58 = vpop.f32.mrf.mxu1 }
  0xb4   :  { %v175_v57 = vmax.f32 %v174_v56, 0.0 }
  0xb6   :  { %208 = vmatmul.f32.vlgmr.msra.gmra.mxu2 %v175_v57 }
 0x139   :  { %v209_v60 = vpop.f32.mrf.mxu2 }
 0x13a   :  { %v210_v61 = vadd.f32 %v209_v60, %v167_v58 }
 0x13c   :  { %v216_v62 = vadd.f32 %v249_v59, %v210_v61 }
 0x13e   :  { %217 = vst [vmem:[#allocation10] sm:$0xff] %v216_v62 }
 0x13f   :  { %228 = dma.vmem_to_hbm [thread:$0]  %s224_s27, 128, %s226_s30, [#allocation4]  }
 0x140   :  { %376 = dma.done.wait [#allocation4], 128  }
 0x141   :  { %377 = vsyncadd [#allocation4], 4294967168 }
 0x142   :  { %233 = vsyncpa [#allocation3], 1 }
 0x143   :  { %234 = vsyncpa [#allocation6], 1 }
 0x144   :  { %235 = vsyncpa [#allocation9], 1 }
 0x145   :  { %236 = vsyncpa [#allocation4], 1 }

</bundles_post_ra>
